<compile_context>
chip_gen: v6e
topology: v6e:2x2x1
jax: 0.10.0
libtpu: 0.0.40
codegen_flags: <defaults>
</compile_context>

<pallas_src>
import functools

import jax
import jax.numpy as jnp
from jax.experimental import pallas as pl
from jax.experimental.pallas import tpu as pltpu


def _ce_label_smooth_kernel(x_ref, t_ref, o_ref, *, epsilon, num_classes,
                            inv_t, block_n, n_total, mask_rows):
    # (block_N, C) logits tile; cast from whatever HBM dtype to f32 in VMEM.
    x = x_ref[...].astype(jnp.float32)
    if inv_t != 1.0:
        x = x * inv_t

    # Numerically stable log-softmax pieces (only (block_N, 1) columns kept).
    m = jnp.max(x, axis=1, keepdims=True)                            # (bn, 1)
    shifted = x - m                                                  # (bn, C)
    lse = jnp.log(jnp.sum(jnp.exp(shifted), axis=1, keepdims=True))  # (bn, 1)

    # Folded label smoothing: single weighted reduction.
    #   w_j = eps/C + (1-eps) * [j == target],  sum_j w_j = 1
    #   loss = -sum_j w_j * (shifted_j - lse) = lse - sum_j w_j * shifted_j
    classes = jax.lax.broadcasted_iota(jnp.int32, x.shape, 1)        # (bn, C)
    tgt = t_ref[...]                                                 # (bn, 1)
    w_hit = jnp.float32(1.0 - epsilon + epsilon / num_classes)
    w_miss = jnp.float32(epsilon / num_classes)
    w = jnp.where(classes == tgt, w_hit, w_miss)                     # (bn, C)
    loss = lse - jnp.sum(w * shifted, axis=1, keepdims=True)         # (bn, 1)

    if mask_rows:
        # Zero-out padded rows of the (ragged) final tile only when needed.
        row = (pl.program_id(0) * block_n
               + jax.lax.broadcasted_iota(jnp.int32, (block_n, 1), 0))
        loss = jnp.where(row < n_total, loss, 0.0)

    o_ref[...] = loss


def _choose_block_n(n, c, itemsize):
    # Target ~4 MiB per logits tile (double-buffered => ~8 MiB), multiple of 16
    # (legal sublane packing for both f32 and bf16), capped at 1024 rows.
    target_bytes = 4 << 20
    bn = max(16, (target_bytes // max(1, c * itemsize)) // 16 * 16)
    bn = min(bn, 1024)
    # Do not over-pad tiny batches.
    n_up = -(-n // 16) * 16
    return min(bn, n_up)


def cross_entropy_label_smooth(inputs, targets, *, num_classes, epsilon=0.1,
                               T=1.0, size_average=True):
    """inputs: (N, C) float logits (f32 or bf16); targets: (N,) int class ids."""
    n, c = inputs.shape
    assert c == num_classes

    itemsize = jnp.dtype(inputs.dtype).itemsize
    block_n = _choose_block_n(n, c, itemsize)
    num_tiles = pl.cdiv(n, block_n)
    n_pad = num_tiles * block_n

    if n_pad != n:
        inputs = jnp.pad(inputs, ((0, n_pad - n), (0, 0)))
        targets = jnp.pad(targets, (0, n_pad - n))
    targets_col = targets.astype(jnp.int32).reshape(n_pad, 1)

    kernel = functools.partial(
        _ce_label_smooth_kernel,
        epsilon=float(epsilon),
        num_classes=int(num_classes),
        inv_t=float(1.0 / T),
        block_n=int(block_n),
        n_total=int(n),
        mask_rows=bool(n_pad != n),
    )

    # Double-buffered logits tile + targets/output columns + headroom.
    vmem_needed = 2 * block_n * c * itemsize + 4 * block_n * 4 + (4 << 20)
    vmem_limit = int(min(64 << 20, max(32 << 20, vmem_needed)))

    per_row = pl.pallas_call(
        kernel,
        out_shape=jax.ShapeDtypeStruct((n_pad, 1), jnp.float32),
        grid=(num_tiles,),
        in_specs=[
            pl.BlockSpec((block_n, c), lambda i: (i, 0)),   # logits tile
            pl.BlockSpec((block_n, 1), lambda i: (i, 0)),   # targets column
        ],
        out_specs=pl.BlockSpec((block_n, 1), lambda i: (i, 0)),
        compiler_params=pltpu.CompilerParams(
            dimension_semantics=("parallel",),
            vmem_limit_bytes=vmem_limit),
    )(inputs, targets_col)

    per_row = per_row[:n, 0]
    if size_average:
        # (-t * lp).mean(0).sum() == sum over all rows / N
        return jnp.sum(per_row) / n
    return per_row


def _reference(inputs, targets, *, num_classes, epsilon=0.1, T=1.0,
               size_average=True):
    x = inputs.astype(jnp.float32) / T
    log_probs = jax.nn.log_softmax(x, axis=1)
    one_hot = jax.nn.one_hot(targets, num_classes, dtype=jnp.float32)
    smoothed = (1.0 - epsilon) * one_hot + epsilon / num_classes
    if size_average:
        return (-smoothed * log_probs).mean(0).sum()
    return (-smoothed * log_probs).sum(1)


if __name__ == "__main__":
    key = jax.random.PRNGKey(0)
    k1, k2 = jax.random.split(key)

    # Ragged batch (N not a multiple of the tile) to exercise masking/padding.
    N, C = 10, 16
    logits = jax.random.normal(k1, (N, C), dtype=jnp.float32)
    labels = jax.random.randint(k2, (N,), 0, C, dtype=jnp.int32)

    # size_average=True (scalar loss)
    loss = cross_entropy_label_smooth(
        logits, labels, num_classes=C, epsilon=0.1, T=1.0, size_average=True)
    loss = jax.block_until_ready(loss)
    ref = _reference(logits, labels, num_classes=C, epsilon=0.1, T=1.0,
                     size_average=True)
    assert jnp.allclose(loss, ref, atol=1e-5, rtol=1e-5), (loss, ref)

    # size_average=False (per-sample losses)
    per_sample = cross_entropy_label_smooth(
        logits, labels, num_classes=C, epsilon=0.1, T=1.0, size_average=False)
    per_sample = jax.block_until_ready(per_sample)
    ref_ps = _reference(logits, labels, num_classes=C, epsilon=0.1, T=1.0,
                        size_average=False)
    assert jnp.allclose(per_sample, ref_ps, atol=1e-5, rtol=1e-5)

    # Non-ragged batch (no padding / no in-kernel masking path).
    N2 = 16
    logits2 = jax.random.normal(k1, (N2, C), dtype=jnp.float32)
    labels2 = jax.random.randint(k2, (N2,), 0, C, dtype=jnp.int32)
    loss2 = cross_entropy_label_smooth(
        logits2, labels2, num_classes=C, epsilon=0.1, T=1.0, size_average=True)
    loss2 = jax.block_until_ready(loss2)
    ref2 = _reference(logits2, labels2, num_classes=C, epsilon=0.1, T=1.0,
                      size_average=True)
    assert jnp.allclose(loss2, ref2, atol=1e-5, rtol=1e-5), (loss2, ref2)

    # Temperature != 1 path and bf16 logits path (halved HBM traffic).
    loss_t = cross_entropy_label_smooth(
        logits.astype(jnp.bfloat16), labels, num_classes=C, epsilon=0.1, T=2.0,
        size_average=True)
    loss_t = jax.block_until_ready(loss_t)
    ref_t = _reference(logits.astype(jnp.bfloat16), labels, num_classes=C,
                       epsilon=0.1, T=2.0, size_average=True)
    assert jnp.allclose(loss_t, ref_t, atol=2e-3, rtol=2e-3), (loss_t, ref_t)

    print("KERNEL_OK")
</pallas_src>

<mosaic_0001>
module attributes {stable_mosaic.version = 11 : i64} {
  func.func @_ce_label_smooth_kernel(%arg0: i32, %arg1: memref<16x16xf32, #tpu.memory_space<vmem>>, %arg2: memref<16x1xi32, #tpu.memory_space<vmem>>, %arg3: memref<16x1xf32, #tpu.memory_space<vmem>>) attributes {dimension_semantics = [#tpu.dimension_semantics<parallel>], iteration_bounds = array<i64: 1>, scalar_prefetch = 0 : i64, scratch_operands = 0 : i64, tpu.core_type = #tpu.core_type<tc>, window_params = [{transform_indices = @transform_0, window_bounds = array<i64: 16, 16>}, {transform_indices = @transform_1, window_bounds = array<i64: 16, 1>}, {transform_indices = @transform_2, window_bounds = array<i64: 16, 1>}]} {
    %c0 = arith.constant 0 : index
    %c0_0 = arith.constant 0 : index
    %0 = vector.load %arg1[%c0, %c0_0] : memref<16x16xf32, #tpu.memory_space<vmem>>, vector<16x16xf32>
    %cst = arith.constant dense<0xFF800000> : vector<16xf32>
    %1 = vector.multi_reduction <maximumf>, %0, %cst [1] : vector<16x16xf32> to vector<16xf32>
    %2 = vector.shape_cast %1 : vector<16xf32> to vector<16x1xf32>
    %3 = vector.broadcast %2 : vector<16x1xf32> to vector<16x16xf32>
    %4 = arith.subf %0, %3 : vector<16x16xf32>
    %5 = math.exp %4 : vector<16x16xf32>
    %cst_1 = arith.constant dense<0.000000e+00> : vector<16xf32>
    %6 = vector.multi_reduction <add>, %5, %cst_1 [1] : vector<16x16xf32> to vector<16xf32>
    %7 = vector.shape_cast %6 : vector<16xf32> to vector<16x1xf32>
    %8 = math.log %7 : vector<16x1xf32>
    %9 = tpu.iota {dimensions = array<i32: 1>} : vector<16x16xi32>
    %c0_2 = arith.constant 0 : index
    %c0_3 = arith.constant 0 : index
    %10 = vector.load %arg2[%c0_2, %c0_3] : memref<16x1xi32, #tpu.memory_space<vmem>>, vector<16x1xi32>
    %11 = vector.broadcast %10 : vector<16x1xi32> to vector<16x16xi32>
    %12 = arith.cmpi eq, %9, %11 : vector<16x16xi32>
    %cst_4 = arith.constant 9.062500e-01 : f32
    %cst_5 = arith.constant 6.250000e-03 : f32
    %13 = vector.broadcast %cst_4 : f32 to vector<16x16xf32>
    %14 = vector.broadcast %cst_5 : f32 to vector<16x16xf32>
    %15 = arith.select %12, %13, %14 : vector<16x16xi1>, vector<16x16xf32>
    %16 = arith.mulf %15, %4 : vector<16x16xf32>
    %cst_6 = arith.constant dense<0.000000e+00> : vector<16xf32>
    %17 = vector.multi_reduction <add>, %16, %cst_6 [1] : vector<16x16xf32> to vector<16xf32>
    %18 = vector.shape_cast %17 : vector<16xf32> to vector<16x1xf32>
    %19 = arith.subf %8, %18 : vector<16x1xf32>
    %c16_i32 = arith.constant 16 : i32
    %20 = arith.muli %arg0, %c16_i32 : i32
    %21 = tpu.iota {dimensions = array<i32: 0>} : vector<16x1xi32>
    %22 = vector.broadcast %20 : i32 to vector<16x1xi32>
    %23 = arith.addi %22, %21 : vector<16x1xi32>
    %c10_i32 = arith.constant 10 : i32
    %24 = vector.broadcast %c10_i32 : i32 to vector<16x1xi32>
    %25 = arith.cmpi slt, %23, %24 : vector<16x1xi32>
    %cst_7 = arith.constant 0.000000e+00 : f32
    %26 = vector.broadcast %cst_7 : f32 to vector<16x1xf32>
    %27 = arith.select %25, %19, %26 : vector<16x1xi1>, vector<16x1xf32>
    %c0_8 = arith.constant 0 : index
    %c0_9 = arith.constant 0 : index
    %28 = vector.load %arg3[%c0_8, %c0_9] : memref<16x1xf32, #tpu.memory_space<vmem>>, vector<16x1xf32>
    tpu.vector_store %arg3[%c0_8, %c0_9], %27 {strides = array<i32>} : memref<16x1xf32, #tpu.memory_space<vmem>>, vector<16x1xf32>,
    return
  }
  func.func @transform_0(%arg0: i32) -> (i32, i32) {
    %c0_i32 = arith.constant 0 : i32
    %c0_i32_0 = arith.constant 0 : i32
    return %arg0, %c0_i32 : i32, i32
  }
  func.func @transform_1(%arg0: i32) -> (i32, i32) {
    %c0_i32 = arith.constant 0 : i32
    %c0_i32_0 = arith.constant 0 : i32
    return %arg0, %c0_i32 : i32, i32
  }
  func.func @transform_2(%arg0: i32) -> (i32, i32) {
    %c0_i32 = arith.constant 0 : i32
    %c0_i32_0 = arith.constant 0 : i32
    return %arg0, %c0_i32 : i32, i32
  }
}

</mosaic_0001>

<bundles_post_ra>
// kernel: tpu_custom_call.1
= control target key start
LH: loop header
LB: loop body
LE: loop exit
PB: predicated region body
PF: predicated region fallthrough
CT: control target
= control target key end

     0   :  { %vm13_vm0 = vcmask 130048   ;;  %v90_v2 = vmov 0   ;;  %v36_v11 = vlaneseq  ;;  %v91_v17 = vmov 0.00625   ;;  %s131_s0 = inlined_call_operand.vmem [shape: f32[16,16], index: 0, kind: input, shape index: {}]   ;;  %s132_s1 = inlined_call_operand.vmem [shape: s32[16,1], index: 1, kind: input, shape index: {}]   ;;  %s133_s2 = inlined_call_operand.vmem [shape: f32[16,1], index: 2, kind: output, shape index: {}]  }
   0x1   :  { %v12_v0 = vld [vmem:[%s131_s0 + $0x8] sm:$0xff]  ;;  %v11_v1 = vld [vmem:[%s131_s0] sm:$0xff]  ;;  %80 = vset.pattern.permute.xlu1 %v90_v2  ;;  %81 = vset.pattern.permute.xlu0 %v90_v2  ;;  %vm71_vm4 = vcmask 7168  }
   0x2   :  { %v39_v3 = vld [vmem:[%s132_s1 + $0x8] sm:$0xff]  ;;  %v17_v4 = vsel %vm13_vm0, %v12_v0, -inf  ;;  %v38_v5 = vld [vmem:[%s132_s1] sm:$0xff]  ;;  %v14_v6 = vsel %vm13_vm0, %v11_v1, -inf  ;;  %v37_v15 = vand.u32 127, %v36_v11  ;;  %v62_v30 = vshrl.u32 %v36_v11, 7 }
   0x3   :  { %44 = vperm.xlu1 %80, %v39_v3   ;;  %18 = vmax.xlane.f32.xlu0 %v17_v4 }
   0x4   :  { %v63_v31 = vadd.s32 8, %v62_v30 }
   0x6   :  { %vm68_vm3 = vcmp.lt.s32.totalorder %v63_v31, 10 }
   0x7   :  { %41 = vperm.xlu1 %80, %v38_v5   ;;  %15 = vmax.xlane.f32.xlu0 %v14_v6 }
  0x7e   :  { %v45_v14 = vpop.permute.xlu1 %44 }
  0x7f   :  { %vm47_vm1 = vcmp.eq.s32.totalorder %v37_v15, %v45_v14 }
  0x80   :  { %v49_v18 = vsel %vm47_vm1, 0.90625, %v91_v17 }
  0x82   :  { %v42_v16 = vpop.permute.xlu1 %41 }
  0x83   :  { %vm46_vm2 = vcmp.eq.s32.totalorder %v37_v15, %v42_v16 }
  0x84   :  { %v48_v22 = vsel %vm46_vm2, 0.90625, %v91_v17 }
  0x8c   :  { %v19_v7 = vpop.xlane.xlu0 %18 }
  0x8d   :  { %v21_v8 = vsub.f32 %v12_v0, %v19_v7 }
  0x8f   :  { %v24_v9 = vmul.f32 1.442695, %v21_v8  ;;  %v51_v21 = vmul.f32 %v49_v18, %v21_v8 }
  0x90   :  { %v16_v10 = vpop.xlane.xlu0 %15 }
  0x91   :  { %82 = vpow2.f32 %v24_v9  ;;  %v20_v12 = vsub.f32 %v11_v1, %v16_v10  ;;  %v55_v24 = vsel %vm13_vm0, %v51_v21, 0.0 }
  0x93   :  { %v22_v13 = vmul.f32 1.442695, %v20_v12  ;;  %v50_v26 = vmul.f32 %v48_v22, %v20_v12 }
  0x95   :  { %84 = vpow2.f32 %v22_v13  ;;  %v52_v27 = vsel %vm13_vm0, %v50_v26, 0.0 }
  0x9e   :  { %v83_v19 = vpop.eup %82 }
  0x9f   :  { %v29_v20 = vsel %vm13_vm0, %v83_v19, 0.0 }
  0xa0   :  { %30 = vadd.xlane.f32.xlu0 %v29_v20 }
  0xa2   :  { %v85_v23 = vpop.eup %84 }
  0xa3   :  { %v26_v25 = vsel %vm13_vm0, %v85_v23, 0.0 }
  0xa4   :  { %56 = vadd.xlane.f32.xlu0 %v55_v24  ;;  %27 = vadd.xlane.f32.xlu1 %v26_v25 }
  0xa8   :  { %53 = vadd.xlane.f32.xlu0 %v52_v27 }
 0x129   :  { %v31_v28 = vpop.xlane.xlu0 %30 }
 0x12a   :  { %86 = vlog2.f32 %v31_v28 }
 0x12d   :  { %v28_v29 = vpop.xlane.xlu1 %27  ;;  %v57_v33 = vpop.xlane.xlu0 %56 }
 0x12e   :  { %88 = vlog2.f32 %v28_v29 }
 0x131   :  { %v54_v39 = vpop.xlane.xlu0 %53 }
 0x137   :  { %v87_v32 = vpop.eup %86 }
 0x138   :  { %v35_v34 = vmul.f32 0.6931472, %v87_v32 }
 0x13a   :  { %v59_v35 = vsub.f32 %v35_v34, %v57_v33 }
 0x13b   :  { %v89_v36 = vpop.eup %88 }
 0x13c   :  { %v70_v37 = vsel %vm68_vm3, %v59_v35, 0.0  ;;  %v33_v38 = vmul.f32 0.6931472, %v89_v36 }
 0x13d   :  { %73 = vst.msk [vmem:[%s133_s2 + $0x8] sm:$0xff] %vm71_vm4, %v70_v37 }
 0x13e   :  { %v58_v40 = vsub.f32 %v33_v38, %v54_v39 }
 0x140   :  { %72 = vst.msk [vmem:[%s133_s2] sm:$0xff] %vm71_vm4, %v58_v40 }

</bundles_post_ra>
